<compile_context>
chip_gen: v7x
topology: tpu7x:2x2x1
jax: 0.10.0
libtpu: 0.0.40
codegen_flags: <defaults>
</compile_context>

<pallas_src>
import jax
import jax.numpy as jnp
from jax.experimental import pallas as pl
from jax.experimental.pallas import tpu as pltpu

LANES = 128
SUBLANES = 8
_GRANULE = SUBLANES * LANES  # 1024 elements = one (8,128) f32 vreg tile


def _learn_sym_relu_kernel(params_ref, x_ref, o_ref):
    # params (SMEM, scalar-prefetched):
    #   [threshold, lower_leak, upper_leak, sub, maxv, minv]
    t = params_ref[0]
    lower_leak = params_ref[1]
    upper_leak = params_ref[2]
    sub = params_ref[3]
    maxv = params_ref[4]
    minv = params_ref[5]

    # Upcast to f32 for compute (no bf16 VPU on v5e); I/O stays native dtype.
    x = x_ref[...].astype(jnp.float32)
    # x = max(x, t) + min(x, t) * lower_leak - sub
    x = jnp.maximum(x, t) + jnp.minimum(x, t) * lower_leak - sub
    # x = -(max(-x, t) + min(-x, t) * upper_leak - sub)
    x = -(jnp.maximum(-x, t) + jnp.minimum(-x, t) * upper_leak - sub)
    # clamp to [minv, maxv]
    x = jnp.minimum(x, maxv)
    x = jnp.maximum(x, minv)
    o_ref[...] = x.astype(o_ref.dtype)


def learn_sym_relu(x, params, *, row_tile=None):
    """Apply LearnSymReLU elementwise (forward pass of the PyTorch module).

    Args:
      x: any-shaped float array (e.g. NCHW), any float dtype (f32/bf16/...).
      params: (6,) float32 array
              [threshold, lower_leak, upper_leak, sub, maxv, minv].
      row_tile: optional override for rows per (rows, 128) block.  Default
                picks ~512 KiB blocks based on dtype.
    """
    orig_shape = x.shape
    dtype = x.dtype
    n = x.size

    # Flatten to a lane-dense (rows, 128) slab; pad only to (8, 128) granule
    # and only when needed (padding costs an extra HBM copy in the wrapper).
    flat = x.reshape(-1)
    n_pad = (-n) % _GRANULE
    if n_pad:
        flat = jnp.concatenate([flat, jnp.zeros((n_pad,), dtype)])
    rows = flat.size // LANES  # always a multiple of 8
    slab = flat.reshape(rows, LANES)

    # Dtype-aware block sizing: target ~512 KiB per block, multiple of 8 rows,
    # clamped to the slab.  Partial last block is handled by Pallas masking,
    # so rows need not divide rt.
    if row_tile is None:
        itemsize = jnp.dtype(dtype).itemsize
        row_tile = max(SUBLANES, (512 * 1024) // (LANES * itemsize))
    rt = min(row_tile, rows)
    rt = max(SUBLANES, (rt // SUBLANES) * SUBLANES)
    grid = (pl.cdiv(rows, rt),)

    out = pl.pallas_call(
        _learn_sym_relu_kernel,
        out_shape=jax.ShapeDtypeStruct((rows, LANES), dtype),
        grid_spec=pltpu.PrefetchScalarGridSpec(
            num_scalar_prefetch=1,  # params -> SMEM before the grid runs
            grid=grid,
            in_specs=[pl.BlockSpec((rt, LANES), lambda i, p_ref: (i, 0))],
            out_specs=pl.BlockSpec((rt, LANES), lambda i, p_ref: (i, 0)),
        ),
        compiler_params=pltpu.CompilerParams(
            dimension_semantics=("parallel",),
        ),
    )(params, slab)

    if n_pad:
        return out.reshape(-1)[:n].reshape(orig_shape)
    return out.reshape(orig_shape)


def make_params(lower_leak_init=0.1, upper_leak_init=0.1, sub_init=0.1,
                maxv_init=10.0, minv_init=-10.0):
    # Deterministic init matching LearnSymReLU.__init__ defaults
    # (threshold initialized to 0.0).
    # TODO(synk): maxv/minv == None variants (clamp disabled) are not folded
    # into this single kernel; pass +/-inf sentinels if needed.
    return jnp.array(
        [0.0, lower_leak_init, upper_leak_init, sub_init, maxv_init, minv_init],
        dtype=jnp.float32,
    )


def _reference(x, params):
    t, ll, ul, sub, maxv, minv = [params[i] for i in range(6)]
    xf = x.astype(jnp.float32)
    xf = jnp.maximum(xf, t) + jnp.minimum(xf, t) * ll - sub
    xf = -(jnp.maximum(-xf, t) + jnp.minimum(-xf, t) * ul - sub)
    xf = jnp.minimum(xf, maxv)
    xf = jnp.maximum(xf, minv)
    return xf.astype(x.dtype)


if __name__ == "__main__":
    key = jax.random.PRNGKey(0)
    x = jax.random.normal(key, (2, 4, 16, 16), dtype=jnp.float32) * 5.0

    params = make_params()
    y = learn_sym_relu(x, params)
    y = jax.block_until_ready(y)

    y_ref = _reference(x, params)
    assert y.shape == x.shape and y.dtype == x.dtype
    assert jnp.allclose(y, y_ref, atol=1e-6, rtol=1e-6)

    # Non-divisible / padded shape (exercises the pad + re-slice path).
    x2 = jax.random.normal(jax.random.PRNGKey(0), (3, 5, 7, 11), dtype=jnp.float32) * 5.0
    y2 = jax.block_until_ready(learn_sym_relu(x2, params))
    assert jnp.allclose(y2, _reference(x2, params), atol=1e-6, rtol=1e-6)

    # bf16 path (native-dtype I/O, f32 compute).
    x3 = jax.random.normal(jax.random.PRNGKey(1), (2, 4, 16, 16), dtype=jnp.bfloat16) * 5.0
    y3 = jax.block_until_ready(learn_sym_relu(x3, params))
    assert y3.dtype == jnp.bfloat16
    assert jnp.allclose(y3.astype(jnp.float32),
                        _reference(x3, params).astype(jnp.float32),
                        atol=1e-2, rtol=1e-2)

    print("KERNEL_OK")
</pallas_src>

<mosaic_0001>
module attributes {stable_mosaic.version = 11 : i64} {
  func.func @_learn_sym_relu_kernel(%arg0: i32, %arg1: memref<6xf32, #tpu.memory_space<smem>>, %arg2: memref<16x128xf32, #tpu.memory_space<vmem>>, %arg3: memref<16x128xf32, #tpu.memory_space<vmem>>) attributes {dimension_semantics = [#tpu.dimension_semantics<parallel>], iteration_bounds = array<i64: 1>, scalar_prefetch = 1 : i64, scratch_operands = 0 : i64, tpu.core_type = #tpu.core_type<tc>, window_params = [{transform_indices = @transform_0, window_bounds = array<i64: 16, 128>}, {transform_indices = @transform_1, window_bounds = array<i64: 16, 128>}]} {
    %c0 = arith.constant 0 : index
    %0 = memref.load %arg1[%c0] : memref<6xf32, #tpu.memory_space<smem>>
    %c1 = arith.constant 1 : index
    %1 = memref.load %arg1[%c1] : memref<6xf32, #tpu.memory_space<smem>>
    %c2 = arith.constant 2 : index
    %2 = memref.load %arg1[%c2] : memref<6xf32, #tpu.memory_space<smem>>
    %c3 = arith.constant 3 : index
    %3 = memref.load %arg1[%c3] : memref<6xf32, #tpu.memory_space<smem>>
    %c4 = arith.constant 4 : index
    %4 = memref.load %arg1[%c4] : memref<6xf32, #tpu.memory_space<smem>>
    %c5 = arith.constant 5 : index
    %5 = memref.load %arg1[%c5] : memref<6xf32, #tpu.memory_space<smem>>
    %c0_0 = arith.constant 0 : index
    %c0_1 = arith.constant 0 : index
    %6 = vector.load %arg2[%c0_0, %c0_1] : memref<16x128xf32, #tpu.memory_space<vmem>>, vector<16x128xf32>
    %7 = vector.broadcast %0 : f32 to vector<16x128xf32>
    %8 = arith.maximumf %6, %7 : vector<16x128xf32>
    %9 = vector.broadcast %0 : f32 to vector<16x128xf32>
    %10 = arith.minimumf %6, %9 : vector<16x128xf32>
    %11 = vector.broadcast %1 : f32 to vector<16x128xf32>
    %12 = arith.mulf %10, %11 : vector<16x128xf32>
    %13 = arith.addf %8, %12 : vector<16x128xf32>
    %14 = vector.broadcast %3 : f32 to vector<16x128xf32>
    %15 = arith.subf %13, %14 : vector<16x128xf32>
    %cst = arith.constant 0.000000e+00 : f32
    %16 = vector.broadcast %cst : f32 to vector<16x128xf32>
    %17 = arith.subf %16, %15 : vector<16x128xf32>
    %18 = vector.broadcast %0 : f32 to vector<16x128xf32>
    %19 = arith.maximumf %17, %18 : vector<16x128xf32>
    %cst_2 = arith.constant 0.000000e+00 : f32
    %20 = vector.broadcast %cst_2 : f32 to vector<16x128xf32>
    %21 = arith.subf %20, %15 : vector<16x128xf32>
    %22 = vector.broadcast %0 : f32 to vector<16x128xf32>
    %23 = arith.minimumf %21, %22 : vector<16x128xf32>
    %24 = vector.broadcast %2 : f32 to vector<16x128xf32>
    %25 = arith.mulf %23, %24 : vector<16x128xf32>
    %26 = arith.addf %19, %25 : vector<16x128xf32>
    %27 = vector.broadcast %3 : f32 to vector<16x128xf32>
    %28 = arith.subf %26, %27 : vector<16x128xf32>
    %cst_3 = arith.constant 0.000000e+00 : f32
    %29 = vector.broadcast %cst_3 : f32 to vector<16x128xf32>
    %30 = arith.subf %29, %28 : vector<16x128xf32>
    %31 = vector.broadcast %4 : f32 to vector<16x128xf32>
    %32 = arith.minimumf %30, %31 : vector<16x128xf32>
    %33 = vector.broadcast %5 : f32 to vector<16x128xf32>
    %34 = arith.maximumf %32, %33 : vector<16x128xf32>
    %c0_4 = arith.constant 0 : index
    %c0_5 = arith.constant 0 : index
    %35 = vector.load %arg3[%c0_4, %c0_5] : memref<16x128xf32, #tpu.memory_space<vmem>>, vector<16x128xf32>
    tpu.vector_store %arg3[%c0_4, %c0_5], %34 {strides = array<i32>} : memref<16x128xf32, #tpu.memory_space<vmem>>, vector<16x128xf32>,
    return
  }
  func.func @transform_0(%arg0: i32, %arg1: memref<6xf32, #tpu.memory_space<smem>>) -> (i32, i32) {
    %c0_i32 = arith.constant 0 : i32
    %c0_i32_0 = arith.constant 0 : i32
    return %arg0, %c0_i32 : i32, i32
  }
  func.func @transform_1(%arg0: i32, %arg1: memref<6xf32, #tpu.memory_space<smem>>) -> (i32, i32) {
    %c0_i32 = arith.constant 0 : i32
    %c0_i32_0 = arith.constant 0 : i32
    return %arg0, %c0_i32 : i32, i32
  }
}

</mosaic_0001>

<bundles_post_ra>
// kernel: tpu_custom_call.1
= control target key start
LH: loop header
LB: loop body
LE: loop exit
PB: predicated region body
PF: predicated region fallthrough
CT: control target
= control target key end

     0   :  { %s221_s0 = inlined_call_operand.hbm [shape: f32[6], index: 0, kind: input, shape index: {}]   ;;  %s222_s1 = inlined_call_operand.hbm [shape: f32[16,128], index: 1, kind: input, shape index: {}]   ;;  %s223_s2 = inlined_call_operand.hbm [shape: f32[16,128], index: 2, kind: output, shape index: {}]  }
   0x1   :  { %s99_s11 = scalar_lea.hbm %s221_s0, 16 }
   0x2   :  { %p100_p0 = scmp.ne.s32.totalorder %s221_s0, %s99_s11  ;;  %p103_p1 = scmp.lt.u32.totalorder %s99_s11, %s221_s0 }
   0x4   :  { %p105_p2 = pnand %p103_p1, %p100_p0 }
   0x6   :  { %108 = shalt.err (!%p105_p2)  }
   0x7   :  { %s159_s16 = smov [#allocation3]  }
   0x8   :  { %8 = dma.hbm_to_smem %s221_s0, 16, %s159_s16, [#allocation2] }
   0x9   :  { %153 = dma.done.wait [#allocation2], 16 }
   0xa   :  { %154 = vsyncadd [#allocation2], 4294967280 }
   0xb   :  { %10 = sfence }
   0xc   :  { %11 = vsyncpa [#allocation5], 0 }
   0xd   :  { %12 = vsyncpa [#allocation6], 0  ;;  %s160_s19 = smov [#allocation4]   ;;  %s109_s23 = scalar_lea.hbm %s222_s1, 256 }
   0xe   :  { %s18_s20 = sshll.u32 %s160_s19, 4  ;;  %p110_p3 = scmp.ne.s32.totalorder %s222_s1, %s109_s23  ;;  %s19_s20 = int_to_ptr.vmem [resolvable:$true] %s18_s20 }
   0xf   :  { %p113_p4 = scmp.lt.u32.totalorder %s109_s23, %s222_s1 }
  0x11   :  { %p115_p5 = pnand %p113_p4, %p110_p3 }
  0x13   :  { %118 = shalt.err (!%p115_p5)
}
  0x14   :  { %s119_s0 = scalar_lea.vmem %s19_s20, 256  ;;  %p124_p7 = scmp.lt.s32.totalorder %s19_s20, %s19_s20 }
  0x15   :  { %p120_p6 = scmp.ne.s32.totalorder %s19_s20, %s119_s0  ;;  %p125_p8 = scmp.lt.s32.totalorder %s119_s0, %s119_s0 }
  0x17   :  { %p126_p9 = por %p125_p8, %p124_p7 }
  0x19   :  { %p127_p10 = pnand %p126_p9, %p120_p6 }
  0x1b   :  { %130 = shalt.err (!%p127_p10)
}
  0x1c   :  { %s161_s28 = smov 128   ;;  %s162_s29 = smov 8  }
  0x1d   :  { %24 = dma.hbm_to_vmem [thread:$0]  %s222_s1, 256, %s19_s20, [#allocation5], %s161_s28, %s161_s28, %s162_s29  }
  0x1e   :  { %155 = dma.done.wait [#allocation5], 256  }
  0x1f   :  { %156 = vsyncadd [#allocation5], 4294967040  ;;  %s28_s4 = sld [smem:[#allocation3]]  ;;  %s89_s5 = sld [smem:[#allocation3 + $0x1]]  ;;  %v34_v0 = vld [vmem:[#allocation4] sm:$0xff]  ;;  %v35_v3 = vld [vmem:[#allocation4 + $0x8] sm:$0xff] }
  0x20   :  { %s91_s6 = sld [smem:[#allocation3 + $0x3]]  ;;  %s90_s7 = sld [smem:[#allocation3 + $0x2]] }
  0x21   :  { %s92_s1 = sld [smem:[#allocation3 + $0x4]]  ;;  %s93_s8 = sld [smem:[#allocation3 + $0x5]] }
  0x22   :  { %s163_s9 = smov [#allocation7]  }
  0x23   :  { %s77_s10 = sshll.u32 %s163_s9, 4  ;;  %s78_s10 = int_to_ptr.vmem [resolvable:$true] %s77_s10 }
  0x24   :  { %s131_s11 = scalar_lea.vmem %s78_s10, 256  ;;  %p136_p12 = scmp.lt.s32.totalorder %s78_s10, %s78_s10 }
  0x25   :  { %v36_v1 = vstv %s28_s4  ;;  %v41_v2 = vstv %s89_s5  ;;  %p132_p11 = scmp.ne.s32.totalorder %s78_s10, %s131_s11  ;;  %p137_p13 = scmp.lt.s32.totalorder %s131_s11, %s131_s11 }
  0x26   :  { %v37_v4 = vmax.f32 %v34_v0, %v36_v1  ;;  %v39_v5 = vmin.f32 %v34_v0, %v36_v1  ;;  %v38_v6 = vmax.f32 %v35_v3, %v36_v1  ;;  %v40_v7 = vmin.f32 %v35_v3, %v36_v1 }
  0x27   :  { %v46_v9 = vstv %s91_s6  ;;  %v55_v16 = vstv %s90_s7  ;;  %v64_v27 = vstv %s92_s1  ;;  %v67_v30 = vstv %s93_s8  ;;  %p138_p0 = por %p137_p13, %p136_p12 }
  0x28   :  { %v42_v8 = vmul.f32 %v41_v2, %v39_v5  ;;  %v43_v10 = vmul.f32 %v41_v2, %v40_v7 }
  0x29   :  { %p139_p1 = pnand %p138_p0, %p132_p11 }
  0x2a   :  { %v44_v11 = vadd.f32 %v42_v8, %v37_v4  ;;  %v45_v12 = vadd.f32 %v43_v10, %v38_v6 }
  0x2c   :  { %v47_v13 = vsub.f32 %v44_v11, %v46_v9  ;;  %v48_v14 = vsub.f32 %v45_v12, %v46_v9 }
  0x2e   :  { %v49_v15 = vsub.f32 0.0, %v47_v13  ;;  %v50_v17 = vsub.f32 0.0, %v48_v14 }
  0x30   :  { %v51_v18 = vmax.f32 %v49_v15, %v36_v1  ;;  %v53_v19 = vmin.f32 %v49_v15, %v36_v1  ;;  %v52_v20 = vmax.f32 %v50_v17, %v36_v1  ;;  %v54_v21 = vmin.f32 %v50_v17, %v36_v1 }
  0x32   :  { %v56_v22 = vmul.f32 %v55_v16, %v53_v19  ;;  %v57_v23 = vmul.f32 %v55_v16, %v54_v21 }
  0x34   :  { %v58_v24 = vadd.f32 %v56_v22, %v51_v18  ;;  %v59_v25 = vadd.f32 %v57_v23, %v52_v20 }
  0x36   :  { %v60_v26 = vsub.f32 %v58_v24, %v46_v9  ;;  %v61_v28 = vsub.f32 %v59_v25, %v46_v9 }
  0x38   :  { %v62_v29 = vsub.f32 0.0, %v60_v26  ;;  %v63_v31 = vsub.f32 0.0, %v61_v28 }
  0x3a   :  { %v65_v32 = vmin.f32 %v62_v29, %v64_v27  ;;  %v66_v33 = vmin.f32 %v63_v31, %v64_v27 }
  0x3c   :  { %v68_v34 = vmax.f32 %v65_v32, %v67_v30  ;;  %v69_v35 = vmax.f32 %v66_v33, %v67_v30 }
  0x3e   :  { %70 = vst [vmem:[#allocation7] sm:$0xff] %v68_v34  ;;  %71 = vst [vmem:[#allocation7 + $0x8] sm:$0xff] %v69_v35 }
  0x3f   :  { %142 = shalt.err (!%p139_p1)
}
  0x40   :  { %s143_s14 = scalar_lea.hbm %s223_s2, 256 }
  0x41   :  { %p144_p2 = scmp.ne.s32.totalorder %s223_s2, %s143_s14  ;;  %p147_p3 = scmp.lt.u32.totalorder %s143_s14, %s223_s2 }
  0x43   :  { %p149_p4 = pnand %p147_p3, %p144_p2 }
  0x45   :  { %152 = shalt.err (!%p149_p4)
}
  0x46   :  { %83 = dma.vmem_to_hbm [thread:$0]  %s78_s10, 256, %s223_s2, [#allocation6], %s161_s28, %s161_s28, %s162_s29  }
  0x47   :  { %157 = dma.done.wait [#allocation6], 256  }
  0x48   :  { %158 = vsyncadd [#allocation6], 4294967040 }
  0x49   :  { %87 = vsyncpa [#allocation5], 1 }
  0x4a   :  { %88 = vsyncpa [#allocation6], 1 }

</bundles_post_ra>
